<compile_context>
chip_gen: v7x
topology: tpu7x:2x2x1
jax: 0.10.0
libtpu: 0.0.40
codegen_flags: <defaults>
</compile_context>

<pallas_src>
import functools

import jax
import jax.numpy as jnp
from jax.experimental import pallas as pl
from jax.experimental.pallas import tpu as pltpu

HID_PAD = 128   # dim_hid (10) padded to a full lane width


def _round_up(x, m):
    return (x + m - 1) // m * m


def _mlp_kernel(x_ref, w1_ref, b1_ref, w2_ref, b2_ref, w3_ref, b3_ref, o_ref):
    # Per-tile bf16 cast of the streamed f32 x (VPU; keeps HBM stream at its
    # original dtype without an extra wrapper-side rewrite of x).
    xb = x_ref[...].astype(jnp.bfloat16)

    # Layer 1: Linear(in_features -> dim_hid[pad 128]) + ReLU, f32 accumulate.
    h = jnp.dot(xb, w1_ref[...], preferred_element_type=jnp.float32)
    h = jnp.maximum(h + b1_ref[...], 0.0).astype(jnp.bfloat16)   # fused bias+ReLU+cast
    # (Dropout p=0 -> identity)

    # Layer 2: Linear(dim_hid -> dim_hid) + ReLU.
    h = jnp.dot(h, w2_ref[...], preferred_element_type=jnp.float32)
    h = jnp.maximum(h + b2_ref[...], 0.0).astype(jnp.bfloat16)
    # (Dropout p=0 -> identity)

    # Output layer: Linear(dim_hid -> out_features), narrow N, f32 out.
    y = jnp.dot(h, w3_ref[...], preferred_element_type=jnp.float32)
    o_ref[...] = (y + b3_ref[...]).astype(o_ref.dtype)


@functools.partial(jax.jit, static_argnames=("tm",))
def mlp_forward(x, w1, b1, w2, b2, w3, b3, *, tm=4096):
    n, in_features = x.shape
    hid_p = w1.shape[1]
    out_features = w3.shape[1]

    # Tile selection: multiple of 8 sublanes. If the whole batch fits in one
    # requested tile, shrink the tile to ~n/2 so the grid has (at least) 2
    # steps and both v7x TensorCores get work under ("parallel",) semantics.
    if n <= tm:
        tm = max(8, _round_up(pl.cdiv(n, 2), 8))
    grid = (pl.cdiv(n, tm),)

    in_specs = [
        pl.BlockSpec((tm, in_features), lambda i: (i, 0)),       # x: streamed f32
        pl.BlockSpec((in_features, hid_p), lambda i: (0, 0)),    # w1: resident
        pl.BlockSpec((1, hid_p), lambda i: (0, 0)),              # b1: resident
        pl.BlockSpec((hid_p, hid_p), lambda i: (0, 0)),          # w2: resident
        pl.BlockSpec((1, hid_p), lambda i: (0, 0)),              # b2: resident
        pl.BlockSpec((hid_p, out_features), lambda i: (0, 0)),   # w3: narrow N
        pl.BlockSpec((1, out_features), lambda i: (0, 0)),       # b3: narrow N
    ]
    out_specs = pl.BlockSpec((tm, out_features), lambda i: (i, 0))

    rows = grid[0] * tm
    flops = 2 * rows * (in_features * hid_p + hid_p * hid_p + hid_p * out_features)
    bytes_accessed = (
        n * in_features * x.dtype.itemsize                       # x stream in (f32)
        + n * out_features * 4                                   # narrow f32 output
        + (w1.size + w2.size + w3.size) * w1.dtype.itemsize      # resident weights
        + (b1.size + b2.size + b3.size) * 4                      # resident biases
    )

    return pl.pallas_call(
        _mlp_kernel,
        out_shape=jax.ShapeDtypeStruct((n, out_features), jnp.float32),
        grid=grid,
        in_specs=in_specs,
        out_specs=out_specs,
        compiler_params=pltpu.CompilerParams(
            dimension_semantics=("parallel",),
            vmem_limit_bytes=48 * 1024 * 1024,
        ),
        cost_estimate=pl.CostEstimate(
            flops=flops, transcendentals=0, bytes_accessed=bytes_accessed),
    )(x, w1, b1, w2, b2, w3, b3)


def init_params(key, in_features, dim_hid, out_features, dtype=jnp.float32):
    """Deterministic init mimicking torch.nn.Linear's uniform(-1/sqrt(fan_in), ...)."""
    def linear(k, fan_in, fan_out):
        kw, kb = jax.random.split(k)
        bound = 1.0 / (fan_in ** 0.5)
        w = jax.random.uniform(kw, (fan_in, fan_out), dtype, -bound, bound)
        b = jax.random.uniform(kb, (1, fan_out), dtype, -bound, bound)
        return w, b

    k1, k2, k3 = jax.random.split(key, 3)
    w1, b1 = linear(k1, in_features, dim_hid)
    w2, b2 = linear(k2, dim_hid, dim_hid)
    w3, b3 = linear(k3, dim_hid, out_features)
    return w1, b1, w2, b2, w3, b3


def pad_params(params, hid_p=HID_PAD, compute_dtype=jnp.bfloat16):
    """Zero-pad the tiny hidden dim to a full 128-lane width and cast weights
    to the compute (bf16) dtype. Zero padding is math-preserving: padded hidden
    columns have w=0, b=0 -> pre-activation 0 -> ReLU 0 -> they contribute
    nothing through w3's padded K rows. w3/b3 keep their real out_features N
    dim so the kernel's output stays narrow."""
    w1, b1, w2, b2, w3, b3 = params
    in_f, hid = w1.shape
    assert hid <= hid_p, "hidden dim must fit in the padded lane width"

    w1p = jnp.zeros((in_f, hid_p), compute_dtype).at[:, :hid].set(w1.astype(compute_dtype))
    b1p = jnp.zeros((1, hid_p), jnp.float32).at[:, :hid].set(b1.astype(jnp.float32))
    w2p = jnp.zeros((hid_p, hid_p), compute_dtype).at[:hid, :hid].set(w2.astype(compute_dtype))
    b2p = jnp.zeros((1, hid_p), jnp.float32).at[:, :hid].set(b2.astype(jnp.float32))
    w3p = jnp.zeros((hid_p, w3.shape[1]), compute_dtype).at[:hid, :].set(w3.astype(compute_dtype))
    b3p = b3.astype(jnp.float32)
    return w1p, b1p, w2p, b2p, w3p, b3p


if __name__ == "__main__":
    # Shapes consistent with the module defaults:
    # hidden_layers=2, dim_hid=10, out_features=3; choose in_features=32.
    # batch=300 exercises the 2-step grid and the ragged (masked) last tile.
    batch, in_features, dim_hid, out_features = 300, 32, 10, 3

    key = jax.random.PRNGKey(0)
    k_x, k_p = jax.random.split(key)
    x = jax.random.normal(k_x, (batch, in_features), jnp.float32)
    params = init_params(k_p, in_features, dim_hid, out_features)
    padded = pad_params(params)

    out = mlp_forward(x, *padded)
    out = jax.block_until_ready(out)
    assert out.shape == (batch, out_features)

    # Reference 1: plain-JAX mirror of the exact kernel math (bf16 operands,
    # f32 accumulation, bf16 inter-layer activations) — should match tightly.
    w1p, b1p, w2p, b2p, w3p, b3p = padded
    xb = x.astype(jnp.bfloat16)
    h = jnp.maximum(jnp.dot(xb, w1p, preferred_element_type=jnp.float32) + b1p,
                    0.0).astype(jnp.bfloat16)
    h = jnp.maximum(jnp.dot(h, w2p, preferred_element_type=jnp.float32) + b2p,
                    0.0).astype(jnp.bfloat16)
    ref_bf16 = jnp.dot(h, w3p, preferred_element_type=jnp.float32) + b3p
    assert jnp.allclose(out, ref_bf16, atol=2e-3, rtol=2e-3)

    # Reference 2: full-f32 torch-equivalent math (loose tol for the bf16
    # compute quantization).
    w1, b1, w2, b2, w3, b3 = params
    ref32 = jnp.maximum(x @ w1 + b1, 0.0)
    ref32 = jnp.maximum(ref32 @ w2 + b2, 0.0)
    ref32 = ref32 @ w3 + b3
    assert jnp.allclose(out, ref32, atol=5e-2, rtol=5e-2)

    print("KERNEL_OK")
</pallas_src>

<mosaic_0001>
module attributes {stable_mosaic.version = 11 : i64} {
  func.func @_mlp_kernel(%arg0: i32, %arg1: memref<152x32xf32, #tpu.memory_space<vmem>>, %arg2: memref<32x128xbf16, #tpu.memory_space<vmem>>, %arg3: memref<1x128xf32, #tpu.memory_space<vmem>>, %arg4: memref<128x128xbf16, #tpu.memory_space<vmem>>, %arg5: memref<1x128xf32, #tpu.memory_space<vmem>>, %arg6: memref<128x3xbf16, #tpu.memory_space<vmem>>, %arg7: memref<1x3xf32, #tpu.memory_space<vmem>>, %arg8: memref<152x3xf32, #tpu.memory_space<vmem>>) attributes {dimension_semantics = [#tpu.dimension_semantics<parallel>], iteration_bounds = array<i64: 2>, scalar_prefetch = 0 : i64, scratch_operands = 0 : i64, tpu.core_type = #tpu.core_type<tc>, window_params = [{transform_indices = @transform_0, window_bounds = array<i64: 152, 32>}, {pipeline_mode = #tpu.pipeline_mode<synchronous>, transform_indices = @transform_1, window_bounds = array<i64: 32, 128>}, {pipeline_mode = #tpu.pipeline_mode<synchronous>, transform_indices = @transform_2, window_bounds = array<i64: 1, 128>}, {pipeline_mode = #tpu.pipeline_mode<synchronous>, transform_indices = @transform_3, window_bounds = array<i64: 128, 128>}, {pipeline_mode = #tpu.pipeline_mode<synchronous>, transform_indices = @transform_4, window_bounds = array<i64: 1, 128>}, {pipeline_mode = #tpu.pipeline_mode<synchronous>, transform_indices = @transform_5, window_bounds = array<i64: 128, 3>}, {pipeline_mode = #tpu.pipeline_mode<synchronous>, transform_indices = @transform_6, window_bounds = array<i64: 1, 3>}, {transform_indices = @transform_7, window_bounds = array<i64: 152, 3>}]} {
    %c0 = arith.constant 0 : index
    %c0_0 = arith.constant 0 : index
    %0 = vector.load %arg1[%c0, %c0_0] : memref<152x32xf32, #tpu.memory_space<vmem>>, vector<152x32xf32>
    %1 = arith.truncf %0 : vector<152x32xf32> to vector<152x32xbf16>
    %c0_1 = arith.constant 0 : index
    %c0_2 = arith.constant 0 : index
    %2 = vector.load %arg2[%c0_1, %c0_2] : memref<32x128xbf16, #tpu.memory_space<vmem>>, vector<32x128xbf16>
    %cst = arith.constant dense<0.000000e+00> : vector<152x128xf32>
    %3 = tpu.matmul %1, %2, %cst {dimension_numbers = #tpu.dot_dimension_numbers<[1], [0], [0], [1], [0, 0, 1, 1], [], []>} : vector<152x32xbf16>, vector<32x128xbf16>, vector<152x128xf32> -> vector<152x128xf32>
    %c0_3 = arith.constant 0 : index
    %c0_4 = arith.constant 0 : index
    %4 = vector.load %arg3[%c0_3, %c0_4] : memref<1x128xf32, #tpu.memory_space<vmem>>, vector<1x128xf32>
    %5 = vector.broadcast %4 : vector<1x128xf32> to vector<152x128xf32>
    %6 = arith.addf %3, %5 : vector<152x128xf32>
    %cst_5 = arith.constant 0.000000e+00 : f32
    %7 = vector.broadcast %cst_5 : f32 to vector<152x128xf32>
    %8 = arith.maximumf %6, %7 : vector<152x128xf32>
    %9 = arith.truncf %8 : vector<152x128xf32> to vector<152x128xbf16>
    %c0_6 = arith.constant 0 : index
    %c0_7 = arith.constant 0 : index
    %10 = vector.load %arg4[%c0_6, %c0_7] : memref<128x128xbf16, #tpu.memory_space<vmem>>, vector<128x128xbf16>
    %cst_8 = arith.constant dense<0.000000e+00> : vector<152x128xf32>
    %11 = tpu.matmul %9, %10, %cst_8 {dimension_numbers = #tpu.dot_dimension_numbers<[1], [0], [0], [1], [0, 0, 1, 1], [], []>} : vector<152x128xbf16>, vector<128x128xbf16>, vector<152x128xf32> -> vector<152x128xf32>
    %c0_9 = arith.constant 0 : index
    %c0_10 = arith.constant 0 : index
    %12 = vector.load %arg5[%c0_9, %c0_10] : memref<1x128xf32, #tpu.memory_space<vmem>>, vector<1x128xf32>
    %13 = vector.broadcast %12 : vector<1x128xf32> to vector<152x128xf32>
    %14 = arith.addf %11, %13 : vector<152x128xf32>
    %cst_11 = arith.constant 0.000000e+00 : f32
    %15 = vector.broadcast %cst_11 : f32 to vector<152x128xf32>
    %16 = arith.maximumf %14, %15 : vector<152x128xf32>
    %17 = arith.truncf %16 : vector<152x128xf32> to vector<152x128xbf16>
    %c0_12 = arith.constant 0 : index
    %c0_13 = arith.constant 0 : index
    %18 = vector.load %arg6[%c0_12, %c0_13] : memref<128x3xbf16, #tpu.memory_space<vmem>>, vector<128x3xbf16>
    %cst_14 = arith.constant dense<0.000000e+00> : vector<152x3xf32>
    %19 = tpu.matmul %17, %18, %cst_14 {dimension_numbers = #tpu.dot_dimension_numbers<[1], [0], [0], [1], [0, 0, 1, 1], [], []>} : vector<152x128xbf16>, vector<128x3xbf16>, vector<152x3xf32> -> vector<152x3xf32>
    %c0_15 = arith.constant 0 : index
    %c0_16 = arith.constant 0 : index
    %20 = vector.load %arg7[%c0_15, %c0_16] : memref<1x3xf32, #tpu.memory_space<vmem>>, vector<1x3xf32>
    %21 = vector.broadcast %20 : vector<1x3xf32> to vector<152x3xf32>
    %22 = arith.addf %19, %21 : vector<152x3xf32>
    %c0_17 = arith.constant 0 : index
    %c0_18 = arith.constant 0 : index
    %23 = vector.load %arg8[%c0_17, %c0_18] : memref<152x3xf32, #tpu.memory_space<vmem>>, vector<152x3xf32>
    tpu.vector_store %arg8[%c0_17, %c0_18], %22 {strides = array<i32>} : memref<152x3xf32, #tpu.memory_space<vmem>>, vector<152x3xf32>,
    return
  }
  func.func @transform_0(%arg0: i32) -> (i32, i32) {
    %c0_i32 = arith.constant 0 : i32
    %c0_i32_0 = arith.constant 0 : i32
    return %arg0, %c0_i32 : i32, i32
  }
  func.func @transform_1(%arg0: i32) -> (i32, i32) {
    %c0_i32 = arith.constant 0 : i32
    %c0_i32_0 = arith.constant 0 : i32
    %c0_i32_1 = arith.constant 0 : i32
    return %c0_i32, %c0_i32_0 : i32, i32
  }
  func.func @transform_2(%arg0: i32) -> (i32, i32) {
    %c0_i32 = arith.constant 0 : i32
    %c0_i32_0 = arith.constant 0 : i32
    %c0_i32_1 = arith.constant 0 : i32
    return %c0_i32, %c0_i32_0 : i32, i32
  }
  func.func @transform_3(%arg0: i32) -> (i32, i32) {
    %c0_i32 = arith.constant 0 : i32
    %c0_i32_0 = arith.constant 0 : i32
    %c0_i32_1 = arith.constant 0 : i32
    return %c0_i32, %c0_i32_0 : i32, i32
  }
  func.func @transform_4(%arg0: i32) -> (i32, i32) {
    %c0_i32 = arith.constant 0 : i32
    %c0_i32_0 = arith.constant 0 : i32
    %c0_i32_1 = arith.constant 0 : i32
    return %c0_i32, %c0_i32_0 : i32, i32
  }
  func.func @transform_5(%arg0: i32) -> (i32, i32) {
    %c0_i32 = arith.constant 0 : i32
    %c0_i32_0 = arith.constant 0 : i32
    %c0_i32_1 = arith.constant 0 : i32
    return %c0_i32, %c0_i32_0 : i32, i32
  }
  func.func @transform_6(%arg0: i32) -> (i32, i32) {
    %c0_i32 = arith.constant 0 : i32
    %c0_i32_0 = arith.constant 0 : i32
    %c0_i32_1 = arith.constant 0 : i32
    return %c0_i32, %c0_i32_0 : i32, i32
  }
  func.func @transform_7(%arg0: i32) -> (i32, i32) {
    %c0_i32 = arith.constant 0 : i32
    %c0_i32_0 = arith.constant 0 : i32
    return %arg0, %c0_i32 : i32, i32
  }
}

</mosaic_0001>

<bundles_post_ra>
// kernel: mlp_forward.1
= control target key start
LH: loop header
LB: loop body
LE: loop exit
PB: predicated region body
PF: predicated region fallthrough
CT: control target
= control target key end

     0   :  { %s1240_s24 = smov 0   ;;  %s1440_s0 = inlined_call_operand.vmem [shape: f32[300,32], index: 0, kind: input, shape index: {}]   ;;  %s1441_s1 = inlined_call_operand.vmem [shape: bf16[32,128], index: 1, kind: input, shape index: {}]   ;;  %s1442_s2 = inlined_call_operand.vmem [shape: f32[1,128], index: 2, kind: input, shape index: {}]   ;;  %s1443_s3 = inlined_call_operand.vmem [shape: bf16[128,128], index: 3, kind: input, shape index: {}]   ;;  %s1444_s4 = inlined_call_operand.vmem [shape: f32[1,128], index: 4, kind: input, shape index: {}]   ;;  %s1445_s5 = inlined_call_operand.vmem [shape: bf16[128,3], index: 5, kind: input, shape index: {}]   ;;  %s1446_s6 = inlined_call_operand.vmem [shape: f32[1,3], index: 6, kind: input, shape index: {}]   ;;  %s1447_s7 = inlined_call_operand.vmem [shape: f32[300,3], index: 7, kind: output, shape index: {}]  }
   0x1 LB: > { %s978_s25 = sadd.s32 4294967295, %s1198_s24   ;;  %p982_p0 = scmp.ge.s32.totalorder %s1198_s24, 1  ;;  %s1198_s24 = sphi %s1240_s24, %s17_s24  }
   0x2   : > { %p238_p1 = scmp.lt.s32.totalorder %s1198_s24, 3 }
   0x4   : > { %p239_p2 = pnand %p982_p0, %p238_p1 }
   0x5   : > { %v1174_v0 = vld [vmem:[%s1441_s1] sm:$0xff] (!%p239_p2)   ;;  %s270_s28 = smul.u32 (!%p239_p2), 19, %s978_s25  ;;  %v1175_v1 = vld [vmem:[%s1441_s1 + $0x8] sm:$0xff] (!%p239_p2)   ;;  %vm335_vm0 = vcmask (!%p239_p2), 261120   ;;  %v1178_v24 = vld [vmem:[%s1443_s3 + $0x10] sm:$0xff] (!%p239_p2)   ;;  %vm902_vm1 = vcmask (!%p239_p2), 23552  }
   0x6   : > { %242 = sbr.rel (%p239_p2) target bundleno = 714 (0x2ca), region = 48  ;;  %1066 = vmatprep.subr.bf16.mxu0 (!%p239_p2), %v1174_v0  ;;  %1162 = vmatprep.subr.bf16.mxu1 (!%p239_p2), %v1174_v0  ;;  %v1176_v2 = vld [vmem:[%s1443_s3] sm:$0xff] (!%p239_p2)   ;;  %v1177_v18 = vld [vmem:[%s1443_s3 + $0x8] sm:$0xff] (!%p239_p2)   ;;  %v1179_v29 = vld [vmem:[%s1443_s3 + $0x18] sm:$0xff] (!%p239_p2)  }
   0x7   : > { %p271_p3 = scmp.lt.s32.totalorder (!%p239_p2), %s270_s28, 37  ;;  %1067 = vmatpush3.bf16.msra.mxu0 (!%p239_p2), %v1174_v0  ;;  %1164 = vmatpush3.bf16.msra.mxu1 (!%p239_p2), %v1174_v0  ;;  %v1180_v32 = vld [vmem:[%s1443_s3 + $0x20] sm:$0xff] (!%p239_p2)   ;;  %v1181_v35 = vld [vmem:[%s1443_s3 + $0x28] sm:$0xff] (!%p239_p2)   ;;  %v1182_v37 = vld [vmem:[%s1443_s3 + $0x30] sm:$0xff] (!%p239_p2)  }
   0x8   : > { %1068 = vmatprep.subr.bf16.mxu0 (!%p239_p2), %v1175_v1  ;;  %1163 = vmatprep.subr.bf16.mxu1 (!%p239_p2), %v1175_v1  ;;  %v1183_v38 = vld [vmem:[%s1443_s3 + $0x38] sm:$0xff] (!%p239_p2)   ;;  %v1184_v39 = vld [vmem:[%s1445_s5] sm:$0xff] (!%p239_p2)   ;;  %v1185_v40 = vld [vmem:[%s1445_s5 + $0x8] sm:$0xff] (!%p239_p2)  }
   0x9   : > { %v1186_v41 = vld [vmem:[%s1445_s5 + $0x10] sm:$0xff] (!%p239_p2)   ;;  %v1187_v42 = vld [vmem:[%s1445_s5 + $0x18] sm:$0xff] (!%p239_p2)   ;;  %v1188_v43 = vld [vmem:[%s1445_s5 + $0x20] sm:$0xff] (!%p239_p2)  }
   0xa   : > { %v1189_v44 = vld [vmem:[%s1445_s5 + $0x28] sm:$0xff] (!%p239_p2)   ;;  %v1338_v45 = vld [vmem:[%s1442_s2] ss:$0 sm:$0xff] (!%p239_p2) }
   0xb   : > { %1069 = vmatpush3.bf16.msra.mxu0 (!%p239_p2), %v1175_v1  ;;  %1165 = vmatpush3.bf16.msra.mxu1 (!%p239_p2), %v1175_v1 }
   0xc   : > { %1090 = vmatprep.subr.bf16.mxu1 (!%p239_p2), %v1176_v2  ;;  %1126 = vmatprep.subr.bf16.mxu0 (!%p239_p2), %v1184_v39 }
   0xd   : > { %s1449_s28 = smov (!%p271_p3, %s270_s28), 37 }
   0xe   : > { %s983_s10 = sshll.u32 %s1449_s28, 3 }
   0xf   : > { %s1265_s13 = scalar_lea.vmem %s1440_s0, %s983_s10  ;;  %s1397_s12 = scalar_lea.vmem %s1447_s7, %s983_s10 }
  0x10   : > { %v283_v3 = vld [vmem:[%s1265_s13] sm:$0xff]  ;;  %v284_v4 = vld [vmem:[%s1265_s13 + $0x8] sm:$0xff]  ;;  %v285_v5 = vld [vmem:[%s1265_s13 + $0x10] sm:$0xff] }
  0x11   : > { %v302_v6 = vpack.c.bf16 %v284_v4, %v283_v3  ;;  %v286_v7 = vld [vmem:[%s1265_s13 + $0x18] sm:$0xff]  ;;  %v287_v8 = vld [vmem:[%s1265_s13 + $0x20] sm:$0xff]  ;;  %v288_v9 = vld [vmem:[%s1265_s13 + $0x28] sm:$0xff] }
  0x12   : > { %v303_v10 = vpack.c.bf16 %v286_v7, %v285_v5  ;;  %v304_v11 = vpack.c.bf16 %v288_v9, %v287_v8  ;;  %v289_v12 = vld [vmem:[%s1265_s13 + $0x30] sm:$0xff]  ;;  %v290_v13 = vld [vmem:[%s1265_s13 + $0x38] sm:$0xff]  ;;  %v291_v14 = vld [vmem:[%s1265_s13 + $0x40] sm:$0xff] }
  0x13   : > { %1070 = vmatprep.mubr.msk.bf16.mxu0 %vm335_vm0, %v302_v6  ;;  %v292_v15 = vld [vmem:[%s1265_s13 + $0x48] sm:$0xff]  ;;  %v299_v16 = vld [vmem:[%s1265_s13 + $0x80] sm:$0xff]  ;;  %v301_v20 = vld [vmem:[%s1265_s13 + $0x90] sm:$0xff]  ;;  %v305_v22 = vpack.c.bf16 %v290_v13, %v289_v12 }
  0x14   : > { %1071 = vmatmul.mubr.msk.bf16.vlgmr.msra.gmra.mrb[0].mxu0 %vm335_vm0, %v303_v10  ;;  %v300_v17 = vld [vmem:[%s1265_s13 + $0x88] sm:$0xff]  ;;  %v311_v21 = vpack.c.bf16 %v301_v20, %v301_v20  ;;  %v306_v23 = vpack.c.bf16 %v292_v15, %v291_v14  ;;  %v293_v25 = vld [vmem:[%s1265_s13 + $0x50] sm:$0xff]  ;;  %v294_v26 = vld [vmem:[%s1265_s13 + $0x58] sm:$0xff] }
  0x15   : > { %1074 = vmatprep.mubr.msk.bf16.mxu0 %vm335_vm0, %v304_v11  ;;  %v310_v19 = vpack.c.bf16 %v300_v17, %v299_v16  ;;  %v295_v27 = vld [vmem:[%s1265_s13 + $0x60] sm:$0xff]  ;;  %v296_v28 = vld [vmem:[%s1265_s13 + $0x68] sm:$0xff]  ;;  %v307_v30 = vpack.c.bf16 %v294_v26, %v293_v25  ;;  %v297_v33 = vld [vmem:[%s1265_s13 + $0x70] sm:$0xff]  ;;  %1127 = vmatpush3.bf16.msra.mxu0 %v1184_v39 }
  0x16   : > { %v308_v31 = vpack.c.bf16 %v296_v28, %v295_v27  ;;  %v298_v34 = vld [vmem:[%s1265_s13 + $0x78] sm:$0xff]  ;;  %1128 = vmatprep.subr.bf16.mxu0 %v1185_v40 }
  0x17   : > { %1086 = vmatprep.mubr.msk.bf16.mxu1 %vm335_vm0, %v310_v19  ;;  %v309_v36 = vpack.c.bf16 %v298_v34, %v297_v33 }
  0x18   : > { %1087 = vmatmul.mubr.msk.bf16.vlgmr.msra.gmra.mrb[0].mxu1 %vm335_vm0, %v311_v21 }
  0x19   : > { %1091 = vmatpush3.bf16.msra.mxu1 %v1176_v2  ;;  %1129 = vmatpush3.bf16.msra.mxu0 %v1185_v40 }
  0x1a   : > { %1092 = vmatprep.subr.bf16.mxu1 %v1177_v18  ;;  %1130 = vmatprep.subr.bf16.mxu0 %v1186_v41 }
  0x1c   : > { %1075 = vmatmul.mubr.msk.bf16.gmra.mrb[4].mxu0 %vm335_vm0, %v305_v22 }
  0x1d   : > { %1078 = vmatprep.mubr.msk.bf16.mxu0 %vm335_vm0, %v306_v23  ;;  %1093 = vmatpush3.bf16.msra.mxu1 %v1177_v18 }
  0x1e   : > { %1094 = vmatprep.subr.bf16.mxu1 %v1178_v24  ;;  %1131 = vmatpush3.bf16.msra.mxu0 %v1186_v41 }
  0x1f   : > { %1132 = vmatprep.subr.bf16.mxu0 %v1187_v42 }
  0x21   : > { %1095 = vmatpush3.bf16.msra.mxu1 %v1178_v24 }
  0x22   : > { %1096 = vmatprep.subr.bf16.mxu1 %v1179_v29  ;;  %1133 = vmatpush3.bf16.msra.mxu0 %v1187_v42 }
  0x23   : > { %1134 = vmatprep.subr.bf16.mxu0 %v1188_v43 }
  0x24   : > { %1079 = vmatmul.mubr.msk.bf16.gmra.mrb[8].mxu0 %vm335_vm0, %v307_v30 }
  0x25   : > { %1082 = vmatprep.mubr.msk.bf16.mxu0 %vm335_vm0, %v308_v31  ;;  %1097 = vmatpush3.bf16.msra.mxu1 %v1179_v29 }
  0x26   : > { %1098 = vmatprep.subr.bf16.mxu1 %v1180_v32  ;;  %1135 = vmatpush3.bf16.msra.mxu0 %v1188_v43 }
  0x27   : > { %1136 = vmatprep.subr.bf16.mxu0 %v1189_v44 }
  0x29   : > { %1099 = vmatpush3.bf16.msra.mxu1 %v1180_v32 }
  0x2a   : > { %1100 = vmatprep.subr.bf16.mxu1 %v1181_v35  ;;  %1137 = vmatpush3.bf16.msra.mxu0 %v1189_v44 }
  0x2c   : > { %1083 = vmatmul.mubr.msk.bf16.gmra.mrb[12].mxu0 %vm335_vm0, %v309_v36 }
  0x2d   : > { %1101 = vmatpush3.bf16.msra.mxu1 %v1181_v35 }
  0x2e   : > { %1102 = vmatprep.subr.bf16.mxu1 %v1182_v37 }
  0x31   : > { %1103 = vmatpush3.bf16.msra.mxu1 %v1182_v37 }
  0x32   : > { %1104 = vmatprep.subr.bf16.mxu1 %v1183_v38 }
  0x35   : > { %1105 = vmatpush3.bf16.msra.mxu1 %v1183_v38 }
  0xe7   : > { %v1072_v46 = vpop.f32.mrb[0].mxu0 }
  0xe8   : > { %v409_v47 = vadd.f32 %v1072_v46, %v1338_v45  ;;  %v400_v48 = vpop.f32.mrb[1].mxu0 }
  0xe9   : > { %v401_v49 = vadd.f32 %v1338_v45, %v400_v48  ;;  %v1073_v50 = vpop.f32.mrb[2].mxu0 }
  0xea   : > { %v412_v51 = vadd.f32 %v1073_v50, %v1338_v45  ;;  %v403_v52 = vpop.f32.mrb[3].mxu0  ;;  %v480_v54 = vmax.f32 %v409_v47, 0.0 }
  0xeb   : > { %v404_v53 = vadd.f32 %v1338_v45, %v403_v52  ;;  %v1088_v56 = vpop.f32.mrb[0].mxu1  ;;  %v478_v57 = vmax.f32 %v401_v49, 0.0  ;;  %v1191_v52 = vld [vmem:[%s1445_s5 + $0x38] sm:$0xff]  }
  0xec   : > { %v481_v55 = vmax.f32 %v412_v51, 0.0  ;;  %v464_v59 = vpop.f32.mrb[1].mxu1  ;;  %v473_v48 = vadd.f32 %v1088_v56, %v1338_v45  ;;  %v1190_v51 = vld [vmem:[%s1445_s5 + $0x30] sm:$0xff]  }
  0xed   : > { %v479_v58 = vmax.f32 %v404_v53, 0.0  ;;  %v465_v61 = vadd.f32 %v1338_v45, %v464_v59  ;;  %v1089_v62 = vpop.f32.mrb[2].mxu1  ;;  %1138 = vmatprep.subr.bf16.mxu0 %v1190_v51 }
  0xee   : > { %v498_v60 = vpack.c.bf16 %v481_v55, %v480_v54  ;;  %v467_v1 = vpop.f32.mrb[3].mxu1  ;;  %v496_v49 = vmax.f32 %v473_v48, 0.0  ;;  %1139 = vmatpush3.bf16.msra.mxu0 %v1190_v51 }
  0xef   : > { %v497_v63 = vpack.c.bf16 %v479_v58, %v478_v57  ;;  %v1076_v0 = vpop.f32.mrb[4].mxu0  ;;  %v494_v4 = vmax.f32 %v465_v61, 0.0  ;;  %v468_v5 = vadd.f32 %v1338_v45, %v467_v1  ;;  %1140 = vmatprep.subr.bf16.mxu0 %v1191_v52 }
  0xf0   : > { %v425_v2 = vadd.f32 %v1076_v0, %v1338_v45  ;;  %v416_v3 = vpop.f32.mrb[5].mxu0  ;;  %v506_v50 = vpack.c.bf16 %v496_v49, %v496_v49 }
  0xf1   : > { %v417_v6 = vadd.f32 %v1338_v45, %v416_v3  ;;  %v1077_v7 = vpop.f32.mrb[6].mxu0  ;;  %1106 = vmatprep.mubr.bf16.mxu1 %v497_v63  ;;  %v495_v10 = vmax.f32 %v468_v5, 0.0 }
  0xf2   : > { %v428_v8 = vadd.f32 %v1077_v7, %v1338_v45  ;;  %v419_v9 = vpop.f32.mrb[7].mxu0  ;;  %1107 = vmatmul.mubr.bf16.vlgmr.msra.gmra.mrb[4].mxu1 %v498_v60  ;;  %v484_v12 = vmax.f32 %v425_v2, 0.0  ;;  %1141 = vmatpush3.bf16.msra.mxu0 %v1191_v52 }
  0xf3   : > { %v420_v11 = vadd.f32 %v1338_v45, %v419_v9  ;;  %v505_v14 = vpack.c.bf16 %v495_v10, %v494_v4  ;;  %v482_v15 = vmax.f32 %v417_v6, 0.0 }
  0xf4   : > { %v485_v13 = vmax.f32 %v428_v8, 0.0 }
  0xf5   : > { %v483_v16 = vmax.f32 %v420_v11, 0.0 }
  0xf6   : > { %v500_v17 = vpack.c.bf16 %v485_v13, %v484_v12 }
  0xf7   : > { %v499_v18 = vpack.c.bf16 %v483_v16, %v482_v15  ;;  %v1080_v19 = vpop.f32.mrb[8].mxu0 }
  0xf8   : > { %v441_v20 = vadd.f32 %v1080_v19, %v1338_v45  ;;  %v432_v21 = vpop.f32.mrb[9].mxu0 }
  0xf9   : > { %v433_v22 = vadd.f32 %v1338_v45, %v432_v21  ;;  %v1081_v23 = vpop.f32.mrb[10].mxu0  ;;  %1110 = vmatprep.mubr.bf16.mxu1 %v499_v18 }
  0xfa   : > { %v444_v24 = vadd.f32 %v1081_v23, %v1338_v45  ;;  %v435_v25 = vpop.f32.mrb[11].mxu0  ;;  %1111 = vmatmul.mubr.bf16.gmra.mrb[8].mxu1 %v500_v17  ;;  %v488_v27 = vmax.f32 %v441_v20, 0.0 }
  0xfb   : > { %v436_v26 = vadd.f32 %v1338_v45, %v435_v25  ;;  %v486_v29 = vmax.f32 %v433_v22, 0.0 }
  0xfc   : > { %v489_v28 = vmax.f32 %v444_v24, 0.0 }
  0xfd   : > { %v487_v30 = vmax.f32 %v436_v26, 0.0 }
  0xfe   : > { %v502_v31 = vpack.c.bf16 %v489_v28, %v488_v27 }
  0xff   : > { %v501_v32 = vpack.c.bf16 %v487_v30, %v486_v29  ;;  %v1084_v33 = vpop.f32.mrb[12].mxu0 }
 0x100   : > { %v457_v34 = vadd.f32 %v1084_v33, %v1338_v45  ;;  %v448_v35 = vpop.f32.mrb[13].mxu0 }
 0x101   : > { %v449_v36 = vadd.f32 %v1338_v45, %v448_v35  ;;  %v1085_v37 = vpop.f32.mrb[14].mxu0  ;;  %1114 = vmatprep.mubr.bf16.mxu1 %v501_v32 }
 0x102   : > { %v460_v38 = vadd.f32 %v1085_v37, %v1338_v45  ;;  %v451_v39 = vpop.f32.mrb[15].mxu0  ;;  %1115 = vmatmul.mubr.bf16.gmra.mrb[12].mxu1 %v502_v31  ;;  %v492_v41 = vmax.f32 %v457_v34, 0.0 }
 0x103   : > { %v452_v40 = vadd.f32 %v1338_v45, %v451_v39  ;;  %v490_v43 = vmax.f32 %v449_v36, 0.0  ;;  %v1368_v45 = vld [vmem:[%s1444_s4] ss:$0 sm:$0xff] }
 0x104   : > { %v493_v42 = vmax.f32 %v460_v38, 0.0 }
 0x105   : > { %v491_v44 = vmax.f32 %v452_v40, 0.0 }
 0x106   : > { %v504_v46 = vpack.c.bf16 %v493_v42, %v492_v41 }
 0x107   : > { %v503_v47 = vpack.c.bf16 %v491_v44, %v490_v43 }
 0x109   : > { %1118 = vmatprep.mubr.bf16.mxu1 %v503_v47 }
 0x10a   : > { %1119 = vmatmul.mubr.bf16.gmra.mrb[16].mxu1 %v504_v46 }
 0x10b   : > { %1122 = vmatprep.mubr.bf16.mxu1 %v505_v14 }
 0x112   : > { %1123 = vmatmul.mubr.bf16.gmra.mrb[20].mxu1 %v506_v50 }
 0x1c5   : > { %v1108_v53 = vpop.f32.mrb[4].mxu1 }
 0x1c6   : > { %v621_v54 = vadd.f32 %v1108_v53, %v1368_v45  ;;  %v612_v55 = vpop.f32.mrb[5].mxu1 }
 0x1c7   : > { %v613_v56 = vadd.f32 %v1368_v45, %v612_v55  ;;  %v1109_v57 = vpop.f32.mrb[6].mxu1 }
 0x1c8   : > { %v624_v58 = vadd.f32 %v1109_v57, %v1368_v45  ;;  %v615_v59 = vpop.f32.mrb[7].mxu1  ;;  %v692_v61 = vmax.f32 %v621_v54, 0.0 }
 0x1c9   : > { %v616_v60 = vadd.f32 %v1368_v45, %v615_v59  ;;  %v690_v63 = vmax.f32 %v613_v56, 0.0 }
 0x1ca   : > { %v693_v62 = vmax.f32 %v624_v58, 0.0  ;;  %v1007_v58 = vld [vmem:[%s1446_s6] ss:$0 sm:$0xff] }
 0x1cb   : > { %v691_v0 = vmax.f32 %v616_v60, 0.0 }
 0x1cc   : > { %v710_v1 = vpack.c.bf16 %v693_v62, %v692_v61 }
 0x1cd   : > { %v709_v2 = vpack.c.bf16 %v691_v0, %v690_v63  ;;  %v1112_v3 = vpop.f32.mrb[8].mxu1 }
 0x1ce   : > { %v637_v4 = vadd.f32 %v1112_v3, %v1368_v45  ;;  %v628_v5 = vpop.f32.mrb[9].mxu1 }
 0x1cf   : > { %v629_v6 = vadd.f32 %v1368_v45, %v628_v5  ;;  %v1113_v7 = vpop.f32.mrb[10].mxu1  ;;  %1142 = vmatprep.mubr.bf16.mxu0 %v709_v2 }
 0x1d0   : > { %v640_v8 = vadd.f32 %v1113_v7, %v1368_v45  ;;  %v631_v9 = vpop.f32.mrb[11].mxu1  ;;  %1143 = vmatmul.mubr.bf16.vlgmr.msra.gmra.mrb[16].mxu0 %v710_v1  ;;  %v696_v11 = vmax.f32 %v637_v4, 0.0 }
 0x1d1   : > { %v632_v10 = vadd.f32 %v1368_v45, %v631_v9  ;;  %v694_v13 = vmax.f32 %v629_v6, 0.0 }
 0x1d2   : > { %v697_v12 = vmax.f32 %v640_v8, 0.0 }
 0x1d3   : > { %v695_v14 = vmax.f32 %v632_v10, 0.0 }
 0x1d4   : > { %v712_v15 = vpack.c.bf16 %v697_v12, %v696_v11 }
 0x1d5   : > { %v711_v16 = vpack.c.bf16 %v695_v14, %v694_v13  ;;  %v1116_v17 = vpop.f32.mrb[12].mxu1 }
 0x1d6   : > { %v653_v18 = vadd.f32 %v1116_v17, %v1368_v45  ;;  %v644_v19 = vpop.f32.mrb[13].mxu1 }
 0x1d7   : > { %v645_v20 = vadd.f32 %v1368_v45, %v644_v19  ;;  %v1117_v21 = vpop.f32.mrb[14].mxu1  ;;  %1146 = vmatprep.mubr.bf16.mxu0 %v711_v16 }
 0x1d8   : > { %v656_v22 = vadd.f32 %v1117_v21, %v1368_v45  ;;  %v647_v23 = vpop.f32.mrb[15].mxu1  ;;  %1147 = vmatmul.mubr.bf16.gmra.mrb[20].mxu0 %v712_v15  ;;  %v700_v25 = vmax.f32 %v653_v18, 0.0 }
 0x1d9   : > { %v648_v24 = vadd.f32 %v1368_v45, %v647_v23  ;;  %v698_v27 = vmax.f32 %v645_v20, 0.0 }
 0x1da   : > { %v701_v26 = vmax.f32 %v656_v22, 0.0 }
 0x1db   : > { %v699_v28 = vmax.f32 %v648_v24, 0.0 }
 0x1dc   : > { %v714_v29 = vpack.c.bf16 %v701_v26, %v700_v25 }
 0x1dd   : > { %v713_v30 = vpack.c.bf16 %v699_v28, %v698_v27  ;;  %v1120_v31 = vpop.f32.mrb[16].mxu1 }
 0x1de   : > { %v669_v32 = vadd.f32 %v1120_v31, %v1368_v45  ;;  %v660_v33 = vpop.f32.mrb[17].mxu1 }
 0x1df   : > { %v661_v34 = vadd.f32 %v1368_v45, %v660_v33  ;;  %v1121_v35 = vpop.f32.mrb[18].mxu1  ;;  %1150 = vmatprep.mubr.bf16.mxu0 %v713_v30 }
 0x1e0   : > { %v672_v36 = vadd.f32 %v1121_v35, %v1368_v45  ;;  %v663_v37 = vpop.f32.mrb[19].mxu1  ;;  %1151 = vmatmul.mubr.bf16.gmra.mrb[24].mxu0 %v714_v29  ;;  %v704_v39 = vmax.f32 %v669_v32, 0.0 }
 0x1e1   : > { %v664_v38 = vadd.f32 %v1368_v45, %v663_v37  ;;  %v702_v41 = vmax.f32 %v661_v34, 0.0 }
 0x1e2   : > { %v705_v40 = vmax.f32 %v672_v36, 0.0 }
 0x1e3   : > { %v703_v42 = vmax.f32 %v664_v38, 0.0 }
 0x1e4   : > { %v716_v43 = vpack.c.bf16 %v705_v40, %v704_v39 }
 0x1e5   : > { %v715_v44 = vpack.c.bf16 %v703_v42, %v702_v41  ;;  %v1124_v46 = vpop.f32.mrb[20].mxu1 }
 0x1e6   : > { %v685_v47 = vadd.f32 %v1124_v46, %v1368_v45  ;;  %v676_v48 = vpop.f32.mrb[21].mxu1 }
 0x1e7   : > { %v677_v49 = vadd.f32 %v1368_v45, %v676_v48  ;;  %v1125_v50 = vpop.f32.mrb[22].mxu1  ;;  %1154 = vmatprep.mubr.bf16.mxu0 %v715_v44 }
 0x1e8   : > { %v679_v51 = vpop.f32.mrb[23].mxu1  ;;  %1155 = vmatmul.mubr.bf16.gmra.mrb[28].mxu0 %v716_v43  ;;  %v708_v53 = vmax.f32 %v685_v47, 0.0 }
 0x1e9   : > { %v680_v52 = vadd.f32 %v1368_v45, %v679_v51  ;;  %v706_v54 = vmax.f32 %v677_v49, 0.0 }
 0x1ea   : > { %v718_v57 = vpack.c.bf16 %v708_v53, %v708_v53 }
 0x1eb   : > { %v707_v55 = vmax.f32 %v680_v52, 0.0 }
 0x1ed   : > { %v717_v56 = vpack.c.bf16 %v707_v55, %v706_v54 }
 0x1ef   : > { %1158 = vmatprep.mubr.bf16.mxu0 %v717_v56 }
 0x1f0   : > { %1159 = vmatmul.mubr.bf16.gmra.mrb[32].mxu0 %v718_v57 }
 0x2a3   : > { %v1144_v45 = vpop.f32.mrb[16].mxu0 }
 0x2a4   : > { %v833_v59 = vadd.f32 %v1144_v45, %v1007_v58  ;;  %v824_v60 = vpop.f32.mrb[17].mxu0 }
 0x2a5   : > { %v825_v61 = vadd.f32 %v1007_v58, %v824_v60  ;;  %v1145_v62 = vpop.f32.mrb[18].mxu0 }
 0x2a6   : > { %905 = vst.msk [vmem:[%s1397_s12 + $0x10] sm:$0xff] %vm902_vm1, %v833_v59  ;;  %v836_v63 = vadd.f32 %v1145_v62, %v1007_v58  ;;  %v827_v0 = vpop.f32.mrb[19].mxu0 }
 0x2a7   : > { %903 = vst.msk [vmem:[%s1397_s12] sm:$0xff] %vm902_vm1, %v825_v61  ;;  %v828_v1 = vadd.f32 %v1007_v58, %v827_v0 }
 0x2a8   : > { %906 = vst.msk [vmem:[%s1397_s12 + $0x18] sm:$0xff] %vm902_vm1, %v836_v63 }
 0x2a9   : > { %904 = vst.msk [vmem:[%s1397_s12 + $0x8] sm:$0xff] %vm902_vm1, %v828_v1 }
 0x2ab   : > { %v1148_v2 = vpop.f32.mrb[20].mxu0 }
 0x2ac   : > { %v849_v3 = vadd.f32 %v1148_v2, %v1007_v58  ;;  %v840_v4 = vpop.f32.mrb[21].mxu0 }
 0x2ad   : > { %v841_v5 = vadd.f32 %v1007_v58, %v840_v4  ;;  %v1149_v6 = vpop.f32.mrb[22].mxu0 }
 0x2ae   : > { %909 = vst.msk [vmem:[%s1397_s12 + $0x30] sm:$0xff] %vm902_vm1, %v849_v3  ;;  %v852_v7 = vadd.f32 %v1149_v6, %v1007_v58  ;;  %v843_v8 = vpop.f32.mrb[23].mxu0 }
 0x2af   : > { %907 = vst.msk [vmem:[%s1397_s12 + $0x20] sm:$0xff] %vm902_vm1, %v841_v5  ;;  %v844_v9 = vadd.f32 %v1007_v58, %v843_v8 }
 0x2b0   : > { %910 = vst.msk [vmem:[%s1397_s12 + $0x38] sm:$0xff] %vm902_vm1, %v852_v7 }
 0x2b1   : > { %908 = vst.msk [vmem:[%s1397_s12 + $0x28] sm:$0xff] %vm902_vm1, %v844_v9 }
 0x2b3   : > { %v1152_v10 = vpop.f32.mrb[24].mxu0 }
 0x2b4   : > { %v865_v11 = vadd.f32 %v1152_v10, %v1007_v58  ;;  %v856_v12 = vpop.f32.mrb[25].mxu0 }
 0x2b5   : > { %v857_v13 = vadd.f32 %v1007_v58, %v856_v12  ;;  %v1153_v14 = vpop.f32.mrb[26].mxu0 }
 0x2b6   : > { %913 = vst.msk [vmem:[%s1397_s12 + $0x50] sm:$0xff] %vm902_vm1, %v865_v11  ;;  %v868_v15 = vadd.f32 %v1153_v14, %v1007_v58  ;;  %v859_v16 = vpop.f32.mrb[27].mxu0 }
 0x2b7   : > { %911 = vst.msk [vmem:[%s1397_s12 + $0x40] sm:$0xff] %vm902_vm1, %v857_v13  ;;  %v860_v17 = vadd.f32 %v1007_v58, %v859_v16 }
 0x2b8   : > { %914 = vst.msk [vmem:[%s1397_s12 + $0x58] sm:$0xff] %vm902_vm1, %v868_v15 }
 0x2b9   : > { %912 = vst.msk [vmem:[%s1397_s12 + $0x48] sm:$0xff] %vm902_vm1, %v860_v17 }
 0x2bb   : > { %v1156_v18 = vpop.f32.mrb[28].mxu0 }
 0x2bc   : > { %v881_v19 = vadd.f32 %v1156_v18, %v1007_v58  ;;  %v872_v20 = vpop.f32.mrb[29].mxu0 }
 0x2bd   : > { %v873_v21 = vadd.f32 %v1007_v58, %v872_v20  ;;  %v1157_v22 = vpop.f32.mrb[30].mxu0 }
 0x2be   : > { %917 = vst.msk [vmem:[%s1397_s12 + $0x70] sm:$0xff] %vm902_vm1, %v881_v19  ;;  %v884_v23 = vadd.f32 %v1157_v22, %v1007_v58  ;;  %v875_v24 = vpop.f32.mrb[31].mxu0 }
 0x2bf   : > { %915 = vst.msk [vmem:[%s1397_s12 + $0x60] sm:$0xff] %vm902_vm1, %v873_v21  ;;  %v876_v25 = vadd.f32 %v1007_v58, %v875_v24 }
 0x2c0   : > { %918 = vst.msk [vmem:[%s1397_s12 + $0x78] sm:$0xff] %vm902_vm1, %v884_v23 }
 0x2c1   : > { %916 = vst.msk [vmem:[%s1397_s12 + $0x68] sm:$0xff] %vm902_vm1, %v876_v25 }
 0x2c3   : > { %v1160_v26 = vpop.f32.mrb[32].mxu0 }
 0x2c4   : > { %v897_v27 = vadd.f32 %v1160_v26, %v1007_v58  ;;  %v888_v28 = vpop.f32.mrb[33].mxu0 }
 0x2c5   : > { %v889_v29 = vadd.f32 %v1007_v58, %v888_v28  ;;  %v1161_v30 = vpop.f32.mrb[34].mxu0 }
 0x2c6   : > { %921 = vst.msk [vmem:[%s1397_s12 + $0x90] sm:$0xff] %vm902_vm1, %v897_v27  ;;  %v891_v31 = vpop.f32.mrb[35].mxu0 }
 0x2c7   : > { %919 = vst.msk [vmem:[%s1397_s12 + $0x80] sm:$0xff] %vm902_vm1, %v889_v29  ;;  %v892_v32 = vadd.f32 %v1007_v58, %v891_v31 }
 0x2c9   : > { %920 = vst.msk [vmem:[%s1397_s12 + $0x88] sm:$0xff] %vm902_vm1, %v892_v32 }
 0x2ca PF: > { %s17_s24 = sadd.s32 1, %s1198_s24  }
 0x2cb   : > { %p14_p4 = scmp.ge.s32.totalorder %s17_s24, 4  }
 0x2cd   :  { %16 = sbr.rel (!%p14_p4) target bundleno = 1 (0x1), region = 78 }

</bundles_post_ra>
